<compile_context>
chip_gen: v7x
topology: tpu7x:2x2x1
jax: 0.10.0
libtpu: 0.0.40
codegen_flags: <defaults>
</compile_context>

<pallas_src>
import functools

import jax
import jax.numpy as jnp
from jax.experimental import pallas as pl
from jax.experimental.pallas import tpu as pltpu

PIXELS = 28
IN_FEATURES = PIXELS ** 2   # 784
H1 = 16
H2 = 16
OUT_FEATURES = 10
PAD = 128                   # lane-padded width for hidden/output features


def _round_up(n, m):
    return (n + m - 1) // m * m


def mlp_kernel(x_ref, w1_ref, w2_ref, w3_ref, bias_ref, o_ref):
    # Cast x to bf16 in-kernel (no bf16 copy of x ever materialized in HBM).
    x = x_ref[...].astype(jnp.bfloat16)
    b1 = bias_ref[0:1, :]
    b2 = bias_ref[1:2, :]
    b3 = bias_ref[2:3, :]
    # fc1 + relu: bf16 operands, f32 MXU accumulation
    h1 = jnp.dot(x, w1_ref[...], preferred_element_type=jnp.float32)
    h1 = jnp.maximum(h1 + b1, 0.0)
    # fc2 + relu: bf16 operands, f32 accumulation
    h2 = jnp.dot(h1.astype(jnp.bfloat16), w2_ref[...],
                 preferred_element_type=jnp.float32)
    h2 = jnp.maximum(h2 + b2, 0.0)
    # out (no activation); zero-padded weight/bias columns keep pad lanes at 0
    out = jnp.dot(h2.astype(jnp.bfloat16), w3_ref[...],
                  preferred_element_type=jnp.float32)
    o_ref[...] = (out + b3).astype(o_ref.dtype)


def prepare_params(w1, b1, w2, b2, w3, b3):
    """Pad feature dims to 128 lanes, cast weights to bf16, pack biases.

    Call once (at init / after each optimizer step), NOT per forward call.
    """
    w1p = jnp.zeros((IN_FEATURES, PAD), jnp.bfloat16).at[:, :H1].set(
        w1.astype(jnp.bfloat16))
    w2p = jnp.zeros((PAD, PAD), jnp.bfloat16).at[:H1, :H2].set(
        w2.astype(jnp.bfloat16))
    w3p = jnp.zeros((PAD, PAD), jnp.bfloat16).at[:H2, :OUT_FEATURES].set(
        w3.astype(jnp.bfloat16))
    biasp = jnp.zeros((8, PAD), jnp.float32)
    biasp = biasp.at[0, :H1].set(b1.reshape(-1))
    biasp = biasp.at[1, :H2].set(b2.reshape(-1))
    biasp = biasp.at[2, :OUT_FEATURES].set(b3.reshape(-1))
    return w1p, w2p, w3p, biasp


@functools.partial(jax.jit, static_argnames=("block_b",))
def mlp_forward(x, w1p, w2p, w3p, biasp, *, block_b=2048):
    """x: (B, 784) f32; padded params from prepare_params. Returns (B, 10) f32."""
    B = x.shape[0]
    bp = _round_up(B, 8)            # pad batch only to the 8-sublane minimum
    if bp != B:
        x = jnp.pad(x, ((0, bp - B), (0, 0)))

    # Aim for >=2 grid steps so the "parallel" batch axis feeds both v7x TCs.
    half = _round_up(max(1, (bp + 1) // 2), 8)
    tb = max(8, min(block_b, half))
    grid = (bp + tb - 1) // tb      # cdiv; partial last block handled by Pallas

    flops = 2 * bp * (IN_FEATURES * PAD + PAD * PAD + PAD * PAD)
    bytes_accessed = (bp * IN_FEATURES * 4                   # x (f32, read once)
                      + w1p.size * 2 + w2p.size * 2 + w3p.size * 2
                      + biasp.size * 4
                      + bp * PAD * 4)                        # padded output

    out_padded = pl.pallas_call(
        mlp_kernel,
        out_shape=jax.ShapeDtypeStruct((bp, PAD), jnp.float32),
        grid=(grid,),
        in_specs=[
            pl.BlockSpec((tb, IN_FEATURES), lambda i: (i, 0)),   # pipelined x tile
            pl.BlockSpec((IN_FEATURES, PAD), lambda i: (0, 0)),  # resident W1 (bf16)
            pl.BlockSpec((PAD, PAD), lambda i: (0, 0)),          # resident W2 (bf16)
            pl.BlockSpec((PAD, PAD), lambda i: (0, 0)),          # resident W3 (bf16)
            pl.BlockSpec((8, PAD), lambda i: (0, 0)),            # packed biases (f32)
        ],
        out_specs=pl.BlockSpec((tb, PAD), lambda i: (i, 0)),     # lane-dense output
        compiler_params=pltpu.CompilerParams(
            dimension_semantics=("parallel",),
            vmem_limit_bytes=48 * 1024 * 1024,
        ),
        cost_estimate=pl.CostEstimate(
            flops=flops, transcendentals=0, bytes_accessed=bytes_accessed),
    )(x, w1p, w2p, w3p, biasp)

    return out_padded[:B, :OUT_FEATURES]


def init_params(key):
    """Deterministic init mimicking nn.Linear's U(-1/sqrt(fan_in), 1/sqrt(fan_in))."""
    def linear(key, fan_in, fan_out):
        kw, kb = jax.random.split(key)
        bound = 1.0 / jnp.sqrt(fan_in)
        # stored as (fan_in, fan_out) == W.T relative to PyTorch's (out, in)
        w = jax.random.uniform(kw, (fan_in, fan_out), jnp.float32, -bound, bound)
        b = jax.random.uniform(kb, (1, fan_out), jnp.float32, -bound, bound)
        return w, b

    k1, k2, k3 = jax.random.split(key, 3)
    w1, b1 = linear(k1, IN_FEATURES, H1)
    w2, b2 = linear(k2, H1, H2)
    w3, b3 = linear(k3, H2, OUT_FEATURES)
    return w1, b1, w2, b2, w3, b3


def reference_forward(x, w1, b1, w2, b2, w3, b3, *, match_kernel_dtypes=False):
    if match_kernel_dtypes:
        f32 = jnp.float32
        h = jnp.dot(x.astype(jnp.bfloat16), w1.astype(jnp.bfloat16),
                    preferred_element_type=f32) + b1
        h = jnp.maximum(h, 0.0)
        h = jnp.dot(h.astype(jnp.bfloat16), w2.astype(jnp.bfloat16),
                    preferred_element_type=f32) + b2
        h = jnp.maximum(h, 0.0)
        return jnp.dot(h.astype(jnp.bfloat16), w3.astype(jnp.bfloat16),
                       preferred_element_type=f32) + b3
    h = jnp.maximum(x @ w1 + b1, 0.0)
    h = jnp.maximum(h @ w2 + b2, 0.0)
    return h @ w3 + b3


if __name__ == "__main__":
    key = jax.random.PRNGKey(0)
    k_params, k_x = jax.random.split(key)
    raw_params = init_params(k_params)
    padded_params = prepare_params(*raw_params)   # hoisted: done once

    # Small single-tile case.
    B = 8
    x = jax.random.normal(k_x, (B, IN_FEATURES), jnp.float32)
    out = jax.block_until_ready(mlp_forward(x, *padded_params))
    assert out.shape == (B, OUT_FEATURES)
    ref_bf16 = reference_forward(x, *raw_params, match_kernel_dtypes=True)
    assert jnp.allclose(out, ref_bf16, atol=2e-3, rtol=2e-3), "mismatch vs bf16 reference"
    ref_f32 = reference_forward(x, *raw_params)
    assert jnp.allclose(out, ref_f32, atol=1e-1, rtol=1e-1), "mismatch vs f32 reference"

    # Multi-tile grid with a partial last block (B=20, tb=16 -> 2 steps, last=8 rows).
    B2 = 20
    x2 = jax.random.normal(jax.random.fold_in(k_x, 1), (B2, IN_FEATURES), jnp.float32)
    out2 = jax.block_until_ready(mlp_forward(x2, *padded_params, block_b=16))
    ref2 = reference_forward(x2, *raw_params, match_kernel_dtypes=True)
    assert out2.shape == (B2, OUT_FEATURES)
    assert jnp.allclose(out2, ref2, atol=2e-3, rtol=2e-3), "mismatch on partial-block path"

    # Multi-tile, evenly divided grid (B=32, tb=8 -> 4 steps).
    B3 = 32
    x3 = jax.random.normal(jax.random.fold_in(k_x, 2), (B3, IN_FEATURES), jnp.float32)
    out3 = jax.block_until_ready(mlp_forward(x3, *padded_params, block_b=8))
    ref3 = reference_forward(x3, *raw_params, match_kernel_dtypes=True)
    assert out3.shape == (B3, OUT_FEATURES)
    assert jnp.allclose(out3, ref3, atol=2e-3, rtol=2e-3), "mismatch on multi-tile path"

    print("KERNEL_OK")
</pallas_src>

<mosaic_0001>
module attributes {stable_mosaic.version = 11 : i64} {
  func.func @mlp_kernel(%arg0: i32, %arg1: memref<8x784xf32, #tpu.memory_space<vmem>>, %arg2: memref<784x128xbf16, #tpu.memory_space<vmem>>, %arg3: memref<128x128xbf16, #tpu.memory_space<vmem>>, %arg4: memref<128x128xbf16, #tpu.memory_space<vmem>>, %arg5: memref<8x128xf32, #tpu.memory_space<vmem>>, %arg6: memref<8x128xf32, #tpu.memory_space<vmem>>) attributes {dimension_semantics = [#tpu.dimension_semantics<parallel>], iteration_bounds = array<i64: 1>, scalar_prefetch = 0 : i64, scratch_operands = 0 : i64, tpu.core_type = #tpu.core_type<tc>, window_params = [{transform_indices = @transform_0, window_bounds = array<i64: 8, 784>}, {pipeline_mode = #tpu.pipeline_mode<synchronous>, transform_indices = @transform_1, window_bounds = array<i64: 784, 128>}, {pipeline_mode = #tpu.pipeline_mode<synchronous>, transform_indices = @transform_2, window_bounds = array<i64: 128, 128>}, {pipeline_mode = #tpu.pipeline_mode<synchronous>, transform_indices = @transform_3, window_bounds = array<i64: 128, 128>}, {pipeline_mode = #tpu.pipeline_mode<synchronous>, transform_indices = @transform_4, window_bounds = array<i64: 8, 128>}, {transform_indices = @transform_5, window_bounds = array<i64: 8, 128>}]} {
    %c0 = arith.constant 0 : index
    %c0_0 = arith.constant 0 : index
    %0 = vector.load %arg1[%c0, %c0_0] : memref<8x784xf32, #tpu.memory_space<vmem>>, vector<8x784xf32>
    %1 = arith.truncf %0 : vector<8x784xf32> to vector<8x784xbf16>
    %c0_1 = arith.constant 0 : index
    %c0_2 = arith.constant 0 : index
    %2 = vector.load %arg5[%c0_1, %c0_2] : memref<8x128xf32, #tpu.memory_space<vmem>>, vector<1x128xf32>
    %c1 = arith.constant 1 : index
    %c0_3 = arith.constant 0 : index
    %3 = vector.load %arg5[%c1, %c0_3] : memref<8x128xf32, #tpu.memory_space<vmem>>, vector<1x128xf32>
    %c2 = arith.constant 2 : index
    %c0_4 = arith.constant 0 : index
    %4 = vector.load %arg5[%c2, %c0_4] : memref<8x128xf32, #tpu.memory_space<vmem>>, vector<1x128xf32>
    %c0_5 = arith.constant 0 : index
    %c0_6 = arith.constant 0 : index
    %5 = vector.load %arg2[%c0_5, %c0_6] : memref<784x128xbf16, #tpu.memory_space<vmem>>, vector<784x128xbf16>
    %cst = arith.constant dense<0.000000e+00> : vector<8x128xf32>
    %6 = tpu.matmul %1, %5, %cst {dimension_numbers = #tpu.dot_dimension_numbers<[1], [0], [0], [1], [0, 0, 1, 1], [], []>} : vector<8x784xbf16>, vector<784x128xbf16>, vector<8x128xf32> -> vector<8x128xf32>
    %7 = vector.broadcast %2 : vector<1x128xf32> to vector<8x128xf32>
    %8 = arith.addf %6, %7 : vector<8x128xf32>
    %cst_7 = arith.constant 0.000000e+00 : f32
    %9 = vector.broadcast %cst_7 : f32 to vector<8x128xf32>
    %10 = arith.maximumf %8, %9 : vector<8x128xf32>
    %11 = arith.truncf %10 : vector<8x128xf32> to vector<8x128xbf16>
    %c0_8 = arith.constant 0 : index
    %c0_9 = arith.constant 0 : index
    %12 = vector.load %arg3[%c0_8, %c0_9] : memref<128x128xbf16, #tpu.memory_space<vmem>>, vector<128x128xbf16>
    %cst_10 = arith.constant dense<0.000000e+00> : vector<8x128xf32>
    %13 = tpu.matmul %11, %12, %cst_10 {dimension_numbers = #tpu.dot_dimension_numbers<[1], [0], [0], [1], [0, 0, 1, 1], [], []>} : vector<8x128xbf16>, vector<128x128xbf16>, vector<8x128xf32> -> vector<8x128xf32>
    %14 = vector.broadcast %3 : vector<1x128xf32> to vector<8x128xf32>
    %15 = arith.addf %13, %14 : vector<8x128xf32>
    %cst_11 = arith.constant 0.000000e+00 : f32
    %16 = vector.broadcast %cst_11 : f32 to vector<8x128xf32>
    %17 = arith.maximumf %15, %16 : vector<8x128xf32>
    %18 = arith.truncf %17 : vector<8x128xf32> to vector<8x128xbf16>
    %c0_12 = arith.constant 0 : index
    %c0_13 = arith.constant 0 : index
    %19 = vector.load %arg4[%c0_12, %c0_13] : memref<128x128xbf16, #tpu.memory_space<vmem>>, vector<128x128xbf16>
    %cst_14 = arith.constant dense<0.000000e+00> : vector<8x128xf32>
    %20 = tpu.matmul %18, %19, %cst_14 {dimension_numbers = #tpu.dot_dimension_numbers<[1], [0], [0], [1], [0, 0, 1, 1], [], []>} : vector<8x128xbf16>, vector<128x128xbf16>, vector<8x128xf32> -> vector<8x128xf32>
    %21 = vector.broadcast %4 : vector<1x128xf32> to vector<8x128xf32>
    %22 = arith.addf %20, %21 : vector<8x128xf32>
    %c0_15 = arith.constant 0 : index
    %c0_16 = arith.constant 0 : index
    %23 = vector.load %arg6[%c0_15, %c0_16] : memref<8x128xf32, #tpu.memory_space<vmem>>, vector<8x128xf32>
    tpu.vector_store %arg6[%c0_15, %c0_16], %22 {strides = array<i32>} : memref<8x128xf32, #tpu.memory_space<vmem>>, vector<8x128xf32>,
    return
  }
  func.func @transform_0(%arg0: i32) -> (i32, i32) {
    %c0_i32 = arith.constant 0 : i32
    %c0_i32_0 = arith.constant 0 : i32
    return %arg0, %c0_i32 : i32, i32
  }
  func.func @transform_1(%arg0: i32) -> (i32, i32) {
    %c0_i32 = arith.constant 0 : i32
    %c0_i32_0 = arith.constant 0 : i32
    %c0_i32_1 = arith.constant 0 : i32
    return %c0_i32, %c0_i32_0 : i32, i32
  }
  func.func @transform_2(%arg0: i32) -> (i32, i32) {
    %c0_i32 = arith.constant 0 : i32
    %c0_i32_0 = arith.constant 0 : i32
    %c0_i32_1 = arith.constant 0 : i32
    return %c0_i32, %c0_i32_0 : i32, i32
  }
  func.func @transform_3(%arg0: i32) -> (i32, i32) {
    %c0_i32 = arith.constant 0 : i32
    %c0_i32_0 = arith.constant 0 : i32
    %c0_i32_1 = arith.constant 0 : i32
    return %c0_i32, %c0_i32_0 : i32, i32
  }
  func.func @transform_4(%arg0: i32) -> (i32, i32) {
    %c0_i32 = arith.constant 0 : i32
    %c0_i32_0 = arith.constant 0 : i32
    %c0_i32_1 = arith.constant 0 : i32
    return %c0_i32, %c0_i32_0 : i32, i32
  }
  func.func @transform_5(%arg0: i32) -> (i32, i32) {
    %c0_i32 = arith.constant 0 : i32
    %c0_i32_0 = arith.constant 0 : i32
    return %arg0, %c0_i32 : i32, i32
  }
}

</mosaic_0001>

<bundles_post_ra>
// kernel: mlp_forward.1
= control target key start
LH: loop header
LB: loop body
LE: loop exit
PB: predicated region body
PF: predicated region fallthrough
CT: control target
= control target key end

     0   :  { %10 = vsyncpa [#allocation3], 0  ;;  %s1423_s0 = inlined_call_operand.hbm [shape: f32[8,784], index: 0, kind: input, shape index: {}]   ;;  %s1424_s1 = inlined_call_operand.hbm [shape: bf16[784,128], index: 1, kind: input, shape index: {}]   ;;  %s1425_s2 = inlined_call_operand.hbm [shape: bf16[128,128], index: 2, kind: input, shape index: {}]   ;;  %s1426_s3 = inlined_call_operand.hbm [shape: bf16[128,128], index: 3, kind: input, shape index: {}]   ;;  %s1427_s4 = inlined_call_operand.vmem [shape: f32[8,128], index: 4, kind: input, shape index: {}]   ;;  %s1428_s5 = inlined_call_operand.hbm [shape: f32[8,128], index: 5, kind: output, shape index: {}]  }
   0x1   :  { %11 = vsyncpa [#allocation6], 0 }
   0x2   :  { %12 = vsyncpa [#allocation9], 0 }
   0x3   :  { %13 = vsyncpa [#allocation4], 0  ;;  %s1283_s18 = smov [#allocation5]   ;;  %s1165_s22 = scalar_lea.hbm %s1424_s1, 6272 }
   0x4   :  { %s29_s19 = sshll.u32 %s1283_s18, 4  ;;  %p1166_p0 = scmp.ne.s32.totalorder %s1424_s1, %s1165_s22  ;;  %s30_s19 = int_to_ptr.vmem [resolvable:$true] %s29_s19 }
   0x5   :  { %p1169_p1 = scmp.lt.u32.totalorder %s1165_s22, %s1424_s1 }
   0x7   :  { %p1171_p2 = pnand %p1169_p1, %p1166_p0 }
   0x9   :  { %1174 = shalt.err (!%p1171_p2)
}
   0xa   :  { %s1175_s27 = scalar_lea.vmem %s30_s19, 6272  ;;  %p1180_p4 = scmp.lt.s32.totalorder %s30_s19, %s30_s19 }
   0xb   :  { %p1176_p3 = scmp.ne.s32.totalorder %s30_s19, %s1175_s27  ;;  %p1181_p5 = scmp.lt.s32.totalorder %s1175_s27, %s1175_s27 }
   0xd   :  { %p1182_p6 = por %p1181_p5, %p1180_p4 }
   0xf   :  { %p1183_p7 = pnand %p1182_p6, %p1176_p3 }
  0x11   :  { %1186 = shalt.err (!%p1183_p7)
}
  0x12   :  { %s1284_s28 = smov 64   ;;  %s1285_s29 = smov 4  }
  0x13   :  { %35 = dma.hbm_to_vmem [thread:$0]  %s1424_s1, 6272, %s30_s19, [#allocation6], %s1284_s28, %s1284_s28, %s1285_s29  }
  0x14   :  { %s1286_s7 = smov [#allocation2]   ;;  %s1287_s9 = smov [#allocation7]  }
  0x15   :  { %s20_s8 = sshll.u32 %s1286_s7, 4  ;;  %s41_s10 = sshll.u32 %s1287_s9, 4  ;;  %s21_s8 = int_to_ptr.vmem [resolvable:$true] %s20_s8  ;;  %s42_s10 = int_to_ptr.vmem [resolvable:$true] %s41_s10 }
  0x16   :  { %s1187_s13 = scalar_lea.hbm %s1423_s0, 896 }
  0x17   :  { %p1188_p8 = scmp.ne.s32.totalorder %s1423_s0, %s1187_s13  ;;  %p1191_p9 = scmp.lt.u32.totalorder %s1187_s13, %s1423_s0 }
  0x19   :  { %p1193_p10 = pnand %p1191_p9, %p1188_p8 }
  0x1b   :  { %1196 = shalt.err (!%p1193_p10)
}
  0x1c   :  { %s1197_s1 = scalar_lea.vmem %s21_s8, 896  ;;  %p1202_p12 = scmp.lt.s32.totalorder %s21_s8, %s21_s8 }
  0x1d   :  { %p1198_p11 = scmp.ne.s32.totalorder %s21_s8, %s1197_s1  ;;  %p1203_p13 = scmp.lt.s32.totalorder %s1197_s1, %s1197_s1 }
  0x1f   :  { %p1204_p0 = por %p1203_p13, %p1202_p12 }
  0x21   :  { %p1205_p1 = pnand %p1204_p0, %p1198_p11 }
  0x23   :  { %1208 = shalt.err (!%p1205_p1)
}
  0x24   :  { %23 = dma.hbm_to_vmem [thread:$0]  %s1423_s0, 896, %s21_s8, [#allocation3]  }
  0x25   :  { %s1209_s22 = scalar_lea.hbm %s1425_s2, 1024 }
  0x26   :  { %p1210_p2 = scmp.ne.s32.totalorder %s1425_s2, %s1209_s22  ;;  %p1213_p3 = scmp.lt.u32.totalorder %s1209_s22, %s1425_s2 }
  0x28   :  { %p1215_p4 = pnand %p1213_p3, %p1210_p2 }
  0x2a   :  { %1218 = shalt.err (!%p1215_p4)
}
  0x2b   :  { %s1219_s27 = scalar_lea.vmem %s42_s10, 1024  ;;  %p1224_p6 = scmp.lt.s32.totalorder %s42_s10, %s42_s10 }
  0x2c   :  { %p1220_p5 = scmp.ne.s32.totalorder %s42_s10, %s1219_s27  ;;  %p1225_p7 = scmp.lt.s32.totalorder %s1219_s27, %s1219_s27 }
  0x2e   :  { %p1226_p8 = por %p1225_p7, %p1224_p6 }
  0x30   :  { %p1227_p9 = pnand %p1226_p8, %p1220_p5 }
  0x32   :  { %1230 = shalt.err (!%p1227_p9)
}
  0x33   :  { %47 = dma.hbm_to_vmem [thread:$0]  %s1425_s2, 1024, %s42_s10, [#allocation6], %s1284_s28, %s1284_s28, %s1285_s29  }
  0x34   :  { %s1288_s6 = smov [#allocation8]   ;;  %s1231_s11 = scalar_lea.hbm %s1426_s3, 1024 }
  0x35   :  { %s53_s7 = sshll.u32 %s1288_s6, 4  ;;  %p1232_p10 = scmp.ne.s32.totalorder %s1426_s3, %s1231_s11  ;;  %s54_s7 = int_to_ptr.vmem [resolvable:$true] %s53_s7 }
  0x36   :  { %p1235_p11 = scmp.lt.u32.totalorder %s1231_s11, %s1426_s3 }
  0x38   :  { %p1237_p12 = pnand %p1235_p11, %p1232_p10 }
  0x3a   :  { %1240 = shalt.err (!%p1237_p12)
}
  0x3b   :  { %s1241_s16 = scalar_lea.vmem %s54_s7, 1024  ;;  %p1246_p0 = scmp.lt.s32.totalorder %s54_s7, %s54_s7 }
  0x3c   :  { %p1242_p13 = scmp.ne.s32.totalorder %s54_s7, %s1241_s16  ;;  %p1247_p1 = scmp.lt.s32.totalorder %s1241_s16, %s1241_s16 }
  0x3e   :  { %p1248_p2 = por %p1247_p1, %p1246_p0 }
  0x40   :  { %p1249_p3 = pnand %p1248_p2, %p1242_p13 }
  0x42   :  { %1252 = shalt.err (!%p1249_p3)
}
  0x43   :  { %59 = dma.hbm_to_vmem [thread:$0]  %s1426_s3, 1024, %s54_s7, [#allocation9], %s1284_s28, %s1284_s28, %s1285_s29  }
  0x44   :  { %1275 = dma.done.wait [#allocation3], 896  }
  0x45   :  { %1276 = vsyncadd [#allocation3], 4294966400 }
  0x46   :  { %1277 = dma.done.wait [#allocation6], 7296  }
  0x47   :  { %1278 = vsyncadd [#allocation6], 4294960000 }
  0x48   :  { %1279 = dma.done.wait [#allocation9], 1024  }
  0x49   :  { %1280 = vsyncadd [#allocation9], 4294966272  ;;  %v1100_v0 = vld [vmem:[#allocation5 + $0x40] sm:$0xff]   ;;  %v1104_v4 = vld [vmem:[#allocation5 + $0x48] sm:$0xff]   ;;  %v1289_v44 = vmov 0.0   ;;  %vm1290_vm0 = vmmov 0  }
  0x4a   :  { %v1101_v1 = vld [vmem:[#allocation5] sm:$0xff]   ;;  %959 = vmatprep.subr.bf16.mxu0 %v1100_v0  ;;  %v1105_v5 = vld [vmem:[#allocation5 + $0x8] sm:$0xff]   ;;  %v1108_v8 = vld [vmem:[#allocation5 + $0x50] sm:$0xff]   ;;  %vm488_vm1 = vcmask 130048   ;;  %s1291_s19 = smov [#allocation10]  }
  0x4b   :  { %v1102_v2 = vld [vmem:[#allocation5 + $0xc0] sm:$0xff]   ;;  %960 = vmatpush3.bf16.msra.mxu0 %v1101_v1  ;;  %v1106_v6 = vld [vmem:[#allocation5 + $0xc8] sm:$0xff]   ;;  %v1109_v9 = vld [vmem:[#allocation5 + $0x10] sm:$0xff]   ;;  %s879_s20 = sshll.u32 %s1291_s19, 4  ;;  %s880_s20 = int_to_ptr.vmem [resolvable:$true] %s879_s20 }
  0x4c   :  { %v1103_v3 = vld [vmem:[#allocation5 + $0x80] sm:$0xff]   ;;  %981 = vmatprep.subr.bf16.mxu1 %v1102_v2  ;;  %961 = vmatprep.subr.bf16.mxu0 %v1104_v4  ;;  %v1107_v7 = vld [vmem:[#allocation5 + $0x88] sm:$0xff]   ;;  %v1110_v10 = vld [vmem:[#allocation5 + $0xd0] sm:$0xff]   ;;  %s1253_s21 = scalar_lea.vmem %s880_s20, 128  ;;  %p1258_p5 = scmp.lt.s32.totalorder %s880_s20, %s880_s20 }
  0x4d   :  { %982 = vmatpush3.bf16.msra.mxu1 %v1103_v3  ;;  %v1111_v11 = vld [vmem:[#allocation5 + $0x90] sm:$0xff]   ;;  %v1112_v12 = vld [vmem:[#allocation5 + $0x58] sm:$0xff]   ;;  %v1116_v16 = vld [vmem:[#allocation5 + $0x60] sm:$0xff]   ;;  %p1254_p4 = scmp.ne.s32.totalorder %s880_s20, %s1253_s21  ;;  %p1259_p6 = scmp.lt.s32.totalorder %s1253_s21, %s1253_s21 }
  0x4e   :  { %983 = vmatprep.subr.bf16.mxu1 %v1106_v6  ;;  %v1113_v13 = vld [vmem:[#allocation5 + $0x18] sm:$0xff]   ;;  %v1117_v17 = vld [vmem:[#allocation5 + $0x20] sm:$0xff]   ;;  %v1120_v20 = vld [vmem:[#allocation5 + $0x68] sm:$0xff]  }
  0x4f   :  { %962 = vmatpush3.bf16.msra.mxu0 %v1105_v5  ;;  %v1114_v14 = vld [vmem:[#allocation5 + $0xd8] sm:$0xff]   ;;  %v1118_v18 = vld [vmem:[#allocation5 + $0xe0] sm:$0xff]   ;;  %v1121_v21 = vld [vmem:[#allocation5 + $0x28] sm:$0xff]   ;;  %p1260_p7 = por %p1259_p6, %p1258_p5 }
  0x50   :  { %963 = vmatprep.subr.bf16.mxu0 %v1108_v8  ;;  %v1115_v15 = vld [vmem:[#allocation5 + $0x98] sm:$0xff]   ;;  %v1119_v19 = vld [vmem:[#allocation5 + $0xa0] sm:$0xff]   ;;  %v1122_v22 = vld [vmem:[#allocation5 + $0xe8] sm:$0xff]  }
  0x51   :  { %984 = vmatpush3.bf16.msra.mxu1 %v1107_v7  ;;  %v1123_v23 = vld [vmem:[#allocation5 + $0xa8] sm:$0xff]   ;;  %v1124_v24 = vld [vmem:[#allocation5 + $0x70] sm:$0xff]   ;;  %v1128_v28 = vld [vmem:[#allocation5 + $0x78] sm:$0xff]   ;;  %p1261_p8 = pnand %p1260_p7, %p1254_p4 }
  0x52   :  { %985 = vmatprep.subr.bf16.mxu1 %v1110_v10  ;;  %v1125_v25 = vld [vmem:[#allocation5 + $0x30] sm:$0xff]   ;;  %v1129_v29 = vld [vmem:[#allocation5 + $0x38] sm:$0xff]   ;;  %v75_v34 = vld [vmem:[#allocation2] sm:$0xff] }
  0x53   :  { %964 = vmatpush3.bf16.msra.mxu0 %v1109_v9  ;;  %v1126_v26 = vld [vmem:[#allocation5 + $0xf0] sm:$0xff]   ;;  %v1130_v30 = vld [vmem:[#allocation5 + $0xf8] sm:$0xff]   ;;  %v82_v35 = vpack.c.bf16 %v75_v34, %v75_v34  ;;  %v1132_v36 = vld [vmem:[#allocation5 + $0x140] sm:$0xff]  }
  0x54   :  { %965 = vmatprep.subr.bf16.mxu0 %v1112_v12  ;;  %v1127_v27 = vld [vmem:[#allocation5 + $0xb0] sm:$0xff]   ;;  %v1131_v33 = vld [vmem:[#allocation5 + $0xb8] sm:$0xff]   ;;  %v78_v37 = vld [vmem:[#allocation2 + $0x18] sm:$0xff] }
  0x55   :  { %986 = vmatpush3.bf16.msra.mxu1 %v1111_v11  ;;  %v76_v31 = vld [vmem:[#allocation2 + $0x8] sm:$0xff]  ;;  %v85_v38 = vpack.c.bf16 %v78_v37, %v78_v37  ;;  %v1133_v39 = vld [vmem:[#allocation5 + $0x100] sm:$0xff]   ;;  %v77_v40 = vld [vmem:[#allocation2 + $0x10] sm:$0xff] }
  0x56   :  { %987 = vmatprep.subr.bf16.mxu1 %v1114_v14  ;;  %v83_v32 = vpack.c.bf16 %v76_v31, %v76_v31  ;;  %v84_v41 = vpack.c.bf16 %v77_v40, %v77_v40  ;;  %v1134_v42 = vld [vmem:[#allocation5 + $0x148] sm:$0xff]   ;;  %v1136_v45 = vld [vmem:[#allocation5 + $0x150] sm:$0xff]   ;;  %v1138_v47 = vld [vmem:[#allocation5 + $0x158] sm:$0xff]  }
  0x57   :  { %966 = vmatpush3.bf16.msra.mxu0 %v1113_v13  ;;  %564 = vmatprep.mubr.bf16.mxu1 %v85_v38  ;;  %v1135_v43 = vld [vmem:[#allocation5 + $0x108] sm:$0xff]   ;;  %v1137_v46 = vld [vmem:[#allocation5 + $0x110] sm:$0xff]   ;;  %v1139_v48 = vld [vmem:[#allocation5 + $0x118] sm:$0xff]  }
  0x58   :  { %967 = vmatprep.subr.bf16.mxu0 %v1116_v16  ;;  %524 = vmatprep.mubr.bf16.mxu0 %v83_v32  ;;  %v1140_v49 = vld [vmem:[#allocation5 + $0x160] sm:$0xff]   ;;  %v1142_v51 = vld [vmem:[#allocation5 + $0x168] sm:$0xff]   ;;  %v80_v54 = vld [vmem:[#allocation2 + $0x28] sm:$0xff] }
  0x59   :  { %988 = vmatpush3.bf16.msra.mxu1 %v1115_v15  ;;  %v1141_v50 = vld [vmem:[#allocation5 + $0x120] sm:$0xff]   ;;  %v1143_v52 = vld [vmem:[#allocation5 + $0x128] sm:$0xff]   ;;  %v1144_v55 = vld [vmem:[#allocation5 + $0x170] sm:$0xff]   ;;  %v87_v56 = vpack.c.bf16 %v80_v54, %v80_v54 }
  0x5a   :  { %989 = vmatprep.subr.bf16.mxu1 %v1118_v18  ;;  %v1148_v53 = vld [vmem:[#allocation5 + $0x180] sm:$0xff]   ;;  %v81_v57 = vld [vmem:[#allocation2 + $0x30] sm:$0xff]  ;;  %v1145_v59 = vld [vmem:[#allocation5 + $0x130] sm:$0xff]  }
  0x5b   :  { %968 = vmatpush3.bf16.msra.mxu0 %v1117_v17  ;;  %v88_v58 = vpack.c.bf16 %v81_v57, %v81_v57  ;;  %v1146_v60 = vld [vmem:[#allocation5 + $0x178] sm:$0xff]   ;;  %v79_v62 = vld [vmem:[#allocation2 + $0x20] sm:$0xff]  ;;  %v1150_v1 = vld [vmem:[#allocation7 + $0x8] sm:$0xff]  }
  0x5c   :  { %969 = vmatprep.subr.bf16.mxu0 %v1120_v20  ;;  %v1147_v61 = vld [vmem:[#allocation5 + $0x138] sm:$0xff]   ;;  %v86_v63 = vpack.c.bf16 %v79_v62, %v79_v62  ;;  %v1149_v0 = vld [vmem:[#allocation7] sm:$0xff]   ;;  %v1152_v3 = vld [vmem:[#allocation7 + $0x18] sm:$0xff]  }
  0x5d   :  { %990 = vmatpush3.bf16.msra.mxu1 %v1119_v19  ;;  %v1151_v2 = vld [vmem:[#allocation7 + $0x10] sm:$0xff]   ;;  %v1153_v4 = vld [vmem:[#allocation7 + $0x20] sm:$0xff]   ;;  %v1154_v5 = vld [vmem:[#allocation7 + $0x28] sm:$0xff]  }
  0x5e   :  { %991 = vmatprep.subr.bf16.mxu1 %v1122_v22  ;;  %v1155_v6 = vld [vmem:[#allocation7 + $0x30] sm:$0xff]   ;;  %v1156_v7 = vld [vmem:[#allocation7 + $0x38] sm:$0xff]   ;;  %v1157_v8 = vld [vmem:[#allocation8] sm:$0xff]  }
  0x5f   :  { %970 = vmatpush3.bf16.msra.mxu0 %v1121_v21  ;;  %v1158_v9 = vld [vmem:[#allocation8 + $0x8] sm:$0xff]   ;;  %v1159_v10 = vld [vmem:[#allocation8 + $0x10] sm:$0xff]   ;;  %v1160_v11 = vld [vmem:[#allocation8 + $0x18] sm:$0xff]  }
  0x60   :  { %971 = vmatprep.subr.bf16.mxu0 %v1124_v24  ;;  %v1161_v12 = vld [vmem:[#allocation8 + $0x20] sm:$0xff]   ;;  %v1162_v13 = vld [vmem:[#allocation8 + $0x28] sm:$0xff]   ;;  %v1163_v40 = vld [vmem:[#allocation8 + $0x30] sm:$0xff]  }
  0x61   :  { %992 = vmatpush3.bf16.msra.mxu1 %v1123_v23  ;;  %v890_v15 = vld [vmem:[%s1427_s4] ss:$0 sm:$0xff] }
  0x62   :  { %993 = vmatprep.subr.bf16.mxu1 %v1126_v26 }
  0x63   :  { %972 = vmatpush3.bf16.msra.mxu0 %v1125_v25 }
  0x64   :  { %973 = vmatprep.subr.bf16.mxu0 %v1128_v28 }
  0x65   :  { %994 = vmatpush3.bf16.msra.mxu1 %v1127_v27 }
  0x66   :  { %995 = vmatprep.subr.bf16.mxu1 %v1130_v30 }
  0x67   :  { %974 = vmatpush3.bf16.msra.mxu0 %v1129_v29 }
  0x68   :  { %1003 = vmatprep.subr.bf16.mxu0 %v1132_v36 }
  0x69   :  { %996 = vmatpush3.bf16.msra.mxu1 %v1131_v33 }
  0x6a   :  { %525 = vmatmul.mubr.bf16.vlgmr.msra.gmra.mrb[0].mxu0 %v82_v35  ;;  %1045 = vmatprep.subr.bf16.mxu1 %v1289_v44 }
  0x6b   :  { %1004 = vmatpush3.bf16.msra.mxu0 %v1133_v39  ;;  %604 = vmatprep.mubr.bf16.mxu0 %v87_v56 }
  0x6c   :  { %565 = vmatmul.mubr.bf16.vlgmr.msra.gmra.mrb[0].mxu1 %v84_v41  ;;  %1005 = vmatprep.subr.bf16.mxu0 %v1134_v42  ;;  %v1164_v41 = vld [vmem:[#allocation8 + $0x38] sm:$0xff]   ;;  %v941_v42 = vld [vmem:[%s1427_s4 + $0x1] ss:$0 sm:$0xff] }
  0x6d   :  { %1047 = vmatprep.mubr.msk.bf16.mxu1 %vm1290_vm0, %v1289_v44  ;;  %1046 = vmatpush3.bf16.msra.mxu1 %v1148_v53 }
  0x6e   :  { %1051 = vmatprep.subr.bf16.mxu1 %v1289_v44 }
  0x6f   :  { %1006 = vmatpush3.bf16.msra.mxu0 %v1135_v43 }
  0x70   :  { %1007 = vmatprep.subr.bf16.mxu0 %v1136_v45 }
  0x73   :  { %1008 = vmatpush3.bf16.msra.mxu0 %v1137_v46 }
  0x74   :  { %1009 = vmatprep.subr.bf16.mxu0 %v1138_v47  ;;  %1048 = vmatmul.mubr.msk.bf16.vlgmr.msra.gmra.mrb[4].mxu1 %vm488_vm1, %v88_v58 }
  0x75   :  { %1067 = vmatprep.mubr.msk.bf16.mxu1 %vm1290_vm0, %v1289_v44  ;;  %1052 = vmatpush3.bf16.msra.mxu1 %v1149_v0 }
  0x76   :  { %1053 = vmatprep.subr.bf16.mxu1 %v1289_v44 }
  0x77   :  { %1010 = vmatpush3.bf16.msra.mxu0 %v1139_v48 }
  0x78   :  { %1011 = vmatprep.subr.bf16.mxu0 %v1140_v49 }
  0x79   :  { %1054 = vmatpush3.bf16.msra.mxu1 %v1150_v1 }
  0x7a   :  { %1055 = vmatprep.subr.bf16.mxu1 %v1289_v44 }
  0x7b   :  { %1012 = vmatpush3.bf16.msra.mxu0 %v1141_v50 }
  0x7c   :  { %1013 = vmatprep.subr.bf16.mxu0 %v1142_v51  ;;  %v950_v51 = vld [vmem:[%s1427_s4 + $0x2] ss:$0 sm:$0xff] }
  0x7d   :  { %1056 = vmatpush3.bf16.msra.mxu1 %v1151_v2 }
  0x7e   :  { %1057 = vmatprep.subr.bf16.mxu1 %v1289_v44 }
  0x7f   :  { %1014 = vmatpush3.bf16.msra.mxu0 %v1143_v52 }
  0x80   :  { %1015 = vmatprep.subr.bf16.mxu0 %v1144_v55 }
  0x81   :  { %1058 = vmatpush3.bf16.msra.mxu1 %v1152_v3 }
  0x82   :  { %1059 = vmatprep.subr.bf16.mxu1 %v1289_v44 }
  0x83   :  { %1016 = vmatpush3.bf16.msra.mxu0 %v1145_v59 }
  0x84   :  { %1017 = vmatprep.subr.bf16.mxu0 %v1146_v60 }
  0x85   :  { %1060 = vmatpush3.bf16.msra.mxu1 %v1153_v4 }
  0x86   :  { %1061 = vmatprep.subr.bf16.mxu1 %v1289_v44 }
  0x87   :  { %1018 = vmatpush3.bf16.msra.mxu0 %v1147_v61 }
  0x88   :  { %1071 = vmatprep.subr.bf16.mxu0 %v1289_v44 }
  0x89   :  { %1062 = vmatpush3.bf16.msra.mxu1 %v1154_v5 }
  0x8a   :  { %605 = vmatmul.mubr.bf16.vlgmr.msra.gmra.mrb[4].mxu0 %v86_v63  ;;  %1063 = vmatprep.subr.bf16.mxu1 %v1289_v44 }
  0x8b   :  { %1087 = vmatprep.mubr.msk.bf16.mxu0 %vm1290_vm0, %v1289_v44  ;;  %1072 = vmatpush3.bf16.msra.mxu0 %v1157_v8 }
  0x8c   :  { %1073 = vmatprep.subr.bf16.mxu0 %v1289_v44 }
  0x8d   :  { %1064 = vmatpush3.bf16.msra.mxu1 %v1155_v6 }
  0x8e   :  { %1065 = vmatprep.subr.bf16.mxu1 %v1289_v44 }
  0x8f   :  { %1074 = vmatpush3.bf16.msra.mxu0 %v1158_v9 }
  0x90   :  { %1075 = vmatprep.subr.bf16.mxu0 %v1289_v44 }
  0x91   :  { %1066 = vmatpush3.bf16.msra.mxu1 %v1156_v7 }
  0x93   :  { %1076 = vmatpush3.bf16.msra.mxu0 %v1159_v10 }
  0x94   :  { %1077 = vmatprep.subr.bf16.mxu0 %v1289_v44 }
  0x97   :  { %1078 = vmatpush3.bf16.msra.mxu0 %v1160_v11 }
  0x98   :  { %1079 = vmatprep.subr.bf16.mxu0 %v1289_v44 }
  0x9b   :  { %1080 = vmatpush3.bf16.msra.mxu0 %v1161_v12 }
  0x9c   :  { %1081 = vmatprep.subr.bf16.mxu0 %v1289_v44 }
  0x9f   :  { %1082 = vmatpush3.bf16.msra.mxu0 %v1162_v13 }
  0xa0   :  { %1083 = vmatprep.subr.bf16.mxu0 %v1289_v44 }
  0xa3   :  { %1084 = vmatpush3.bf16.msra.mxu0 %v1163_v40 }
  0xa4   :  { %1085 = vmatprep.subr.bf16.mxu0 %v1289_v44 }
  0xa7   :  { %1086 = vmatpush3.bf16.msra.mxu0 %v1164_v41 }
 0x13d   :  { %v975_v14 = vpop.f32.mrb[0].mxu0 }
 0x13e   :  { %v976_v16 = vpop.f32.mrb[1].mxu0 }
 0x13f   :  { %v977_v17 = vadd.f32 %v976_v16, %v975_v14  ;;  %v978_v18 = vpop.f32.mrb[2].mxu0  ;;  %v997_v19 = vpop.f32.mrb[0].mxu1 }
 0x140   :  { %v979_v20 = vpop.f32.mrb[3].mxu0  ;;  %v998_v22 = vpop.f32.mrb[1].mxu1 }
 0x141   :  { %v527_v21 = vadd.f32 %v977_v17, %v890_v15  ;;  %v999_v23 = vadd.f32 %v998_v22, %v997_v19  ;;  %v1000_v24 = vpop.f32.mrb[2].mxu1 }
 0x142   :  { %v1001_v25 = vpop.f32.mrb[3].mxu1 }
 0x143   :  { %v567_v26 = vadd.f32 %v999_v23, %v527_v21 }
 0x147   :  { %v646_v27 = vpop.f32.mrb[4].mxu1 }
 0x148   :  { %v1049_v28 = vpop.f32.mrb[5].mxu1 }
 0x149   :  { %v649_v29 = vpop.f32.mrb[6].mxu1 }
 0x14a   :  { %v1050_v30 = vpop.f32.mrb[7].mxu1 }
 0x15d   :  { %v1019_v31 = vpop.f32.mrb[4].mxu0 }
 0x15e   :  { %v1020_v32 = vpop.f32.mrb[5].mxu0 }
 0x15f   :  { %v1021_v33 = vadd.f32 %v1020_v32, %v1019_v31  ;;  %v1022_v34 = vpop.f32.mrb[6].mxu0 }
 0x160   :  { %v1023_v35 = vpop.f32.mrb[7].mxu0 }
 0x161   :  { %v607_v36 = vadd.f32 %v1021_v33, %v567_v26 }
 0x163   :  { %v647_v37 = vadd.f32 %v646_v27, %v607_v36 }
 0x165   :  { %v652_v38 = vmax.f32 %v647_v37, 0.0 }
 0x167   :  { %v653_v39 = vpack.c.bf16 %v652_v38, %v652_v38 }
 0x169   :  { %1068 = vmatmul.mubr.bf16.vlgmr.msra.gmra.mrb[8].mxu1 %v653_v39 }
 0x23c   :  { %v756_v43 = vpop.f32.mrb[8].mxu1 }
 0x23d   :  { %v757_v45 = vadd.f32 %v941_v42, %v756_v43  ;;  %v1069_v46 = vpop.f32.mrb[9].mxu1 }
 0x23e   :  { %v759_v47 = vpop.f32.mrb[10].mxu1 }
 0x23f   :  { %v762_v48 = vmax.f32 %v757_v45, 0.0  ;;  %v1070_v49 = vpop.f32.mrb[11].mxu1 }
 0x241   :  { %v763_v50 = vpack.c.bf16 %v762_v48, %v762_v48 }
 0x243   :  { %1088 = vmatmul.mubr.bf16.vlgmr.msra.gmra.mrb[8].mxu0 %v763_v50 }
 0x316   :  { %v866_v44 = vpop.f32.mrb[8].mxu0 }
 0x317   :  { %v867_v52 = vadd.f32 %v950_v51, %v866_v44  ;;  %v1089_v53 = vpop.f32.mrb[9].mxu0 }
 0x318   :  { %v869_v54 = vpop.f32.mrb[10].mxu0 }
 0x319   :  { %872 = vst [vmem:[#allocation10] sm:$0xff] %v867_v52  ;;  %v1090_v55 = vpop.f32.mrb[11].mxu0 }
 0x31a   :  { %1264 = shalt.err (!%p1261_p8)
}
 0x31b   :  { %s1265_s4 = scalar_lea.hbm %s1428_s5, 128 }
 0x31c   :  { %p1266_p9 = scmp.ne.s32.totalorder %s1428_s5, %s1265_s4  ;;  %p1269_p10 = scmp.lt.u32.totalorder %s1265_s4, %s1428_s5 }
 0x31e   :  { %p1271_p11 = pnand %p1269_p10, %p1266_p9 }
 0x320   :  { %1274 = shalt.err (!%p1271_p11)
}
 0x321   :  { %882 = dma.vmem_to_hbm [thread:$0]  %s880_s20, 128, %s1428_s5, [#allocation4]  }
 0x322   :  { %1281 = dma.done.wait [#allocation4], 128  }
 0x323   :  { %1282 = vsyncadd [#allocation4], 4294967168 }
 0x324   :  { %886 = vsyncpa [#allocation3], 1 }
 0x325   :  { %887 = vsyncpa [#allocation6], 1 }
 0x326   :  { %888 = vsyncpa [#allocation9], 1 }
 0x327   :  { %889 = vsyncpa [#allocation4], 1 }

</bundles_post_ra>
